<compile_context>
chip_gen: v7x
topology: tpu7x:2x2x1
jax: 0.10.0
libtpu: 0.0.40
codegen_flags: <defaults>
</compile_context>

<pallas_src>
import functools

import numpy as np

import jax
import jax.numpy as jnp
from jax.experimental import pallas as pl


# -----------------------------------------------------------------------------
# Pallas kernels
# -----------------------------------------------------------------------------
def fused_post_tree_kernel(x4_ref, wih4_ref, bih4_ref, whh4_ref, bhh4_ref,
                           treeh_ref, wihc_ref, bihc_ref,
                           whhf_ref, bhhf_ref, whhb_ref, bhhb_ref,
                           a_ref, cw_ref, cb_ref, *rest,
                           seq_len, n_nodes, hidden, layer_num):
    """Everything after the tree LSTM, fused into one kernel."""
    T, N, H = seq_len, n_nodes, hidden
    conv_refs = rest[:2 * layer_num]
    out_ref = rest[2 * layer_num]

    # ---- 4 feature GRUs -----------------------------------------------------
    # gi for all (gru, t, n) in one K=128 matmul (block-diag, gate-major cols).
    gi4 = (jnp.dot(x4_ref[...], wih4_ref[...], preferred_element_type=jnp.float32)
           + bih4_ref[...])                                   # (T*N, 12H)
    whh4 = whh4_ref[...]
    bhh4 = bhh4_ref[...]
    GH = 4 * H                                                # 128
    h4 = jnp.zeros((N, GH), jnp.float32)                      # [h1|h2|h3|h4]
    for t in range(T):                                        # unrolled, T=8
        gi = gi4[t * N:(t + 1) * N]                           # (N, 12H)
        gh = jnp.dot(h4, whh4, preferred_element_type=jnp.float32) + bhh4
        r = jax.nn.sigmoid(gi[:, :GH] + gh[:, :GH])
        z = jax.nn.sigmoid(gi[:, GH:2 * GH] + gh[:, GH:2 * GH])
        n = jnp.tanh(gi[:, 2 * GH:] + r * gh[:, 2 * GH:])
        h4 = (1.0 - z) * n + z * h4

    # ---- bidirectional combine GRU over the 5-step sequence -----------------
    # step 0 = tree-LSTM root h, steps 1..4 = final h of gru_1..gru_4.
    seq = [treeh_ref[...]] + [h4[:, g * H:(g + 1) * H] for g in range(4)]
    x_comb = jnp.concatenate(seq, axis=0)                     # (5N, H)
    gi_all = (jnp.dot(x_comb, wihc_ref[...], preferred_element_type=jnp.float32)
              + bihc_ref[...])                                # (5N, 6H) = [fwd 3H | bwd 3H]
    gi_f = gi_all[:, :3 * H]
    gi_b = gi_all[:, 3 * H:]
    whhf = whhf_ref[...]; bhhf = bhhf_ref[...]
    whhb = whhb_ref[...]; bhhb = bhhb_ref[...]

    def gru_cell(gi, gh, h):                                  # PyTorch r,z,n order
        r = jax.nn.sigmoid(gi[:, :H] + gh[:, :H])
        z = jax.nn.sigmoid(gi[:, H:2 * H] + gh[:, H:2 * H])
        n = jnp.tanh(gi[:, 2 * H:] + r * gh[:, 2 * H:])
        return (1.0 - z) * n + z * h

    S = 5
    hf = jnp.zeros((N, H), jnp.float32)
    hb = jnp.zeros((N, H), jnp.float32)
    outs_f = [None] * S
    outs_b = [None] * S
    for s in range(S):                                        # unrolled, S=5
        ghf = jnp.dot(hf, whhf, preferred_element_type=jnp.float32) + bhhf
        hf = gru_cell(gi_f[s * N:(s + 1) * N], ghf, hf)
        outs_f[s] = hf
        tb = S - 1 - s                                        # backward time index
        ghb = jnp.dot(hb, whhb, preferred_element_type=jnp.float32) + bhhb
        hb = gru_cell(gi_b[tb * N:(tb + 1) * N], ghb, hb)
        outs_b[tb] = hb

    # torch.flatten(cat(fwd, bwd, -1), 1): [t0_f t0_b t1_f t1_b ... t4_f t4_b]
    feat = jnp.concatenate(
        [p for s in range(S) for p in (outs_f[s], outs_b[s])], axis=1)  # (N, 10H)

    # ---- connect Linear -> GCN stack -> global max pool -> Softmax ----------
    x = (jnp.dot(feat, cw_ref[...], preferred_element_type=jnp.float32)
         + cb_ref[...])                                       # (N, H)
    a = a_ref[...]                                            # (N, N) normalized adj
    for i in range(layer_num):
        w = conv_refs[2 * i][...]
        b = conv_refs[2 * i + 1][...]
        x = jnp.dot(a, jnp.dot(x, w, preferred_element_type=jnp.float32),
                    preferred_element_type=jnp.float32) + b
        if i < layer_num - 1:
            x = jnp.maximum(x, 0.0)

    # global_max_pool with a single graph (batch vector of zeros) + Softmax(dim=1)
    m = jnp.max(x, axis=0, keepdims=True)                     # (1, C)
    e = jnp.exp(m - jnp.max(m, axis=1, keepdims=True))
    out_ref[...] = e / jnp.sum(e, axis=1, keepdims=True)


def treelstm_level_kernel(x_ref, cc_ref, ch_ref,
                          wioux_ref, bioux_ref, wiouh_ref, biouh_ref,
                          wfx_ref, bfx_ref, wfh_ref, bfh_ref,
                          c_ref, h_ref, *, num_children, num_nodes):
    """ChildSumTreeLSTM.node_forward for a whole level of nodes at once.

    x: (M, D); cc/ch: (K*M, H) child-major flattened, zero-padded children
    (zero padding matches PyTorch's zero child for leaves and contributes 0).
    """
    K, M = num_children, num_nodes
    H = wfh_ref.shape[0]
    x = x_ref[...]                                            # (M, D)
    cc = cc_ref[...]                                          # (K*M, H)
    ch = ch_ref[...]                                          # (K*M, H)

    child_h_sum = jnp.zeros((M, H), jnp.float32)
    for k in range(K):
        child_h_sum = child_h_sum + ch[k * M:(k + 1) * M]

    iou = (jnp.dot(x, wioux_ref[...], preferred_element_type=jnp.float32)
           + bioux_ref[...]
           + jnp.dot(child_h_sum, wiouh_ref[...], preferred_element_type=jnp.float32)
           + biouh_ref[...])                                  # (M, 3H) = [i|o|u]
    i = jax.nn.sigmoid(iou[:, :H])
    o = jax.nn.sigmoid(iou[:, H:2 * H])
    u = jnp.tanh(iou[:, 2 * H:])

    fx = jnp.dot(x, wfx_ref[...], preferred_element_type=jnp.float32) + bfx_ref[...]
    # one stacked (K*M, H) @ (H, H) dot instead of K per-child matmuls
    fh = jnp.dot(ch, wfh_ref[...], preferred_element_type=jnp.float32) + bfh_ref[...]
    fc = jax.nn.sigmoid(fh + jnp.concatenate([fx] * K, axis=0)) * cc
    fc_sum = jnp.zeros((M, H), jnp.float32)
    for k in range(K):
        fc_sum = fc_sum + fc[k * M:(k + 1) * M]

    c = i * u + fc_sum
    h = o * jnp.tanh(c)
    c_ref[...] = c
    h_ref[...] = h


# -----------------------------------------------------------------------------
# Kernel wrappers
# -----------------------------------------------------------------------------
def treelstm_level(x, child_c, child_h, p, num_children, num_nodes):
    H = p["wfh"].shape[0]
    kern = functools.partial(treelstm_level_kernel,
                             num_children=num_children, num_nodes=num_nodes)
    return pl.pallas_call(
        kern,
        out_shape=(jax.ShapeDtypeStruct((num_nodes, H), jnp.float32),
                   jax.ShapeDtypeStruct((num_nodes, H), jnp.float32)),
    )(x, child_c, child_h,
      p["wioux"], p["bioux"], p["wiouh"], p["biouh"],
      p["wfx"], p["bfx"], p["wfh"], p["bfh"])


def pack_blockdiag_gru(wih, whh, bih, bhh):
    """Pack G independent GRUs into block-diagonal, gate-major weights.

    wih: (G, D, 3H), per-GRU column layout [r|z|n].  Returns wih_bd (G*D, 3GH),
    whh_bd (G*H, 3GH), bih_bd/bhh_bd (1, 3GH) with columns [r(GH) | z(GH) | n(GH)],
    GRU-major within each gate block, so per-GRU math stays fully decoupled.
    """
    G, D, H3 = wih.shape
    H = H3 // 3
    wih_bd = jnp.zeros((G * D, 3 * G * H), jnp.float32)
    whh_bd = jnp.zeros((G * H, 3 * G * H), jnp.float32)
    bih_bd = jnp.zeros((1, 3 * G * H), jnp.float32)
    bhh_bd = jnp.zeros((1, 3 * G * H), jnp.float32)
    for g in range(G):
        for q in range(3):
            col = q * G * H + g * H
            wih_bd = wih_bd.at[g * D:(g + 1) * D, col:col + H].set(wih[g, :, q * H:(q + 1) * H])
            whh_bd = whh_bd.at[g * H:(g + 1) * H, col:col + H].set(whh[g, :, q * H:(q + 1) * H])
            bih_bd = bih_bd.at[:, col:col + H].set(bih[g, :, q * H:(q + 1) * H])
            bhh_bd = bhh_bd.at[:, col:col + H].set(bhh[g, :, q * H:(q + 1) * H])
    return wih_bd, whh_bd, bih_bd, bhh_bd


# -----------------------------------------------------------------------------
# Model glue (tree recursion, packing, normalization) -- plain JAX / Python
# -----------------------------------------------------------------------------
class Tree:
    def __init__(self, node_id, children=()):
        self.id = node_id
        self.children = list(children)
        self.num_children = len(self.children)
        self.state = None


def tree_lstm_forward_batched(p, feature_1):
    """ChildSumTreeLSTM over all trees, batched level-wise (leaves first).

    One pallas_call per tree level; packing uses a single gather per level
    (index arrays built from the static tree structure) instead of per-node
    stacks.  Missing children are padded with the zero sentinel row, which
    matches PyTorch's zero child for leaves exactly.
    Returns the root hidden states stacked in tree order: (num_trees, H).
    """
    H = p["wfh"].shape[0]

    # concatenate all trees' node inputs once; remember per-tree row offsets
    inputs_list = [inp for _, inp in feature_1]
    offsets, off = [], 0
    for inp in inputs_list:
        offsets.append(off)
        off += inp.shape[0]
    inputs_all = (jnp.concatenate(inputs_list, axis=0)
                  if len(inputs_list) > 1 else inputs_list[0])

    # group nodes by level (leaves = level 0)
    levels = {}

    def assign(ti, node):
        lvl = 0 if not node.children else 1 + max(assign(ti, c) for c in node.children)
        levels.setdefault(lvl, []).append((ti, node))
        return lvl

    for ti, (tree, _) in enumerate(feature_1):
        assign(ti, tree)

    # state row 0 is the zero sentinel used for missing / leaf children
    state_c = jnp.zeros((1, H), jnp.float32)
    state_h = jnp.zeros((1, H), jnp.float32)
    slot = {}
    next_slot = 1

    for lvl in sorted(levels):
        nodes = levels[lvl]
        M = len(nodes)
        K = max(1, max(n.num_children for _, n in nodes))

        x_idx = np.array([offsets[ti] + n.id for ti, n in nodes], dtype=np.int32)
        x = inputs_all[x_idx]                                 # (M, D), one gather

        child_idx = np.zeros((K, M), dtype=np.int32)          # 0 -> zero sentinel
        for m, (ti, n) in enumerate(nodes):
            for k in range(n.num_children):
                child_idx[k, m] = slot[(ti, id(n.children[k]))]
        flat = child_idx.reshape(K * M)
        child_c = state_c[flat]                               # (K*M, H), one gather
        child_h = state_h[flat]

        c_out, h_out = treelstm_level(x, child_c, child_h, p, K, M)

        state_c = jnp.concatenate([state_c, c_out], axis=0)
        state_h = jnp.concatenate([state_h, h_out], axis=0)
        for m, (ti, n) in enumerate(nodes):
            slot[(ti, id(n))] = next_slot + m
        next_slot += M

    roots = np.array([slot[(ti, id(tree))] for ti, (tree, _) in enumerate(feature_1)],
                     dtype=np.int32)
    return state_h[roots]                                     # (num_trees, H)


def gcn_norm_adj(edge_index, num_nodes):
    """Dense GCN normalization: D^{-1/2} (A + I) D^{-1/2}, A[dst, src] = 1."""
    src, dst = edge_index[0], edge_index[1]
    A = jnp.zeros((num_nodes, num_nodes), jnp.float32).at[dst, src].set(1.0)
    A = A + jnp.eye(num_nodes, dtype=jnp.float32)
    deg = jnp.sum(A, axis=1)
    d = jnp.where(deg > 0, 1.0 / jnp.sqrt(deg), 0.0)
    return A * d[:, None] * d[None, :]


def vulnerability_forward(params, my_data, edge_index):
    # Same index shuffle as the PyTorch forward.
    feature_1 = my_data[1]              # list of (tree, inputs) per statement
    feature_2 = my_data[0]              # (N, T, D) sequences
    feature_3 = my_data[2]
    feature_4 = my_data[3]
    feature_5 = my_data[4]

    N, T, D = feature_2.shape
    H = params["h_size"]
    L = params["layer_num"]
    C = params["convs"][-1][0].shape[1]

    # --- tree LSTM over each AST (level-batched across all trees) ---
    tree_h = tree_lstm_forward_batched(params["tree"], feature_1)         # (N, H)

    # --- pack the 4 feature GRUs block-diagonally (gate-major columns) ---
    gf = params["gru_feat"]
    wih4, whh4, bih4, bhh4 = pack_blockdiag_gru(gf["wih"], gf["whh"],
                                                gf["bih"], gf["bhh"])

    # lane-concat the 4 sequences, time-major: row t*N+n, cols [x2|x3|x4|x5]
    x4 = jnp.stack([feature_2, feature_3, feature_4, feature_5], axis=0)  # (4, N, T, D)
    x4 = jnp.transpose(x4, (2, 1, 0, 3)).reshape(T * N, 4 * D)            # (T*N, 4D)

    # --- combine GRU: both directions' W_ih concatenated along the output ---
    gc = params["gru_combine"]
    wihc = jnp.concatenate([gc["wih"][0], gc["wih"][1]], axis=1)          # (H, 6H)
    bihc = jnp.concatenate([gc["bih"][0], gc["bih"][1]], axis=1)          # (1, 6H)

    # Dropout layers are identity in eval mode.
    # TODO(synk): variable-length pack_padded/pad_packed handling not modeled;
    #             all sequences here share one length, so final h == out[:, -1].

    a_hat = gcn_norm_adj(edge_index, N)

    conv_args = []
    for w, b in params["convs"]:
        conv_args.extend([w, b])

    kern = functools.partial(fused_post_tree_kernel,
                             seq_len=T, n_nodes=N, hidden=H, layer_num=L)
    return pl.pallas_call(
        kern,
        out_shape=jax.ShapeDtypeStruct((1, C), jnp.float32),
    )(x4, wih4, bih4, whh4, bhh4, tree_h,
      wihc, bihc, gc["whh"][0], gc["bhh"][0], gc["whh"][1], gc["bhh"][1],
      a_hat, params["connect_w"], params["connect_b"], *conv_args)


# -----------------------------------------------------------------------------
# Deterministic parameter / input construction
# -----------------------------------------------------------------------------
def init_params(key, D, H, C, num_conv_layers):
    keys = iter(jax.random.split(key, 64))

    def nrm(shape):
        return 0.1 * jax.random.normal(next(keys), shape, dtype=jnp.float32)

    tree = dict(
        wioux=nrm((D, 3 * H)), bioux=nrm((1, 3 * H)),
        wiouh=nrm((H, 3 * H)), biouh=nrm((1, 3 * H)),
        wfx=nrm((D, H)), bfx=nrm((1, H)),
        wfh=nrm((H, H)), bfh=nrm((1, H)),
    )

    def gru_stack(num, in_dim):
        return dict(wih=nrm((num, in_dim, 3 * H)), whh=nrm((num, H, 3 * H)),
                    bih=nrm((num, 1, 3 * H)), bhh=nrm((num, 1, 3 * H)))

    convs = []
    for i in range(num_conv_layers):
        out_dim = H if i < num_conv_layers - 1 else C
        convs.append((nrm((H, out_dim)), nrm((1, out_dim))))

    return dict(
        h_size=H, layer_num=num_conv_layers,
        tree=tree,
        gru_feat=gru_stack(4, D),        # gru_1..gru_4 stacked on a leading axis
        gru_combine=gru_stack(2, H),     # fwd / bwd of the bidirectional GRU
        connect_w=nrm((H * 5 * 2, H)), connect_b=nrm((1, H)),
        convs=convs,
    )


if __name__ == "__main__":
    # Small shapes consistent with the module: h_size = feature dim = 32,
    # num_node_feature = 5 (fixed by the architecture), 2 classes, 3 GCN layers.
    H = 32            # h_size
    D = 32            # feature_representation_size
    C = 2             # num_classes
    L = 3             # num_conv_layers
    N = 8             # graph nodes / statements (batch of sequences)
    T = 8             # sequence length for feature_2..feature_5
    TREE_NODES = 3    # each AST: root with two leaf children

    key = jax.random.PRNGKey(0)
    k_par, k2, k3, k4, k5, k_tree = jax.random.split(key, 6)
    params = init_params(k_par, D, H, C, L)

    feature_2 = jax.random.normal(k2, (N, T, D), jnp.float32)
    feature_3 = jax.random.normal(k3, (N, T, D), jnp.float32)
    feature_4 = jax.random.normal(k4, (N, T, D), jnp.float32)
    feature_5 = jax.random.normal(k5, (N, T, D), jnp.float32)

    tree_inputs = jax.random.normal(k_tree, (N, TREE_NODES, D), jnp.float32)
    feature_1 = [(Tree(0, [Tree(1), Tree(2)]), tree_inputs[i]) for i in range(N)]

    # my_data layout matches the PyTorch forward's indexing:
    # my_data[0]->feature_2, my_data[1]->feature_1 (trees), my_data[2..4]->feature_3..5
    my_data = [feature_2, feature_1, feature_3, feature_4, feature_5]

    # Undirected ring graph over the N nodes.
    src = jnp.arange(N, dtype=jnp.int32)
    dst = (src + 1) % N
    edge_index = jnp.stack([jnp.concatenate([src, dst]),
                            jnp.concatenate([dst, src])], axis=0)

    out = vulnerability_forward(params, my_data, edge_index)
    out = jax.block_until_ready(out)
    assert out.shape == (1, C)
    assert bool(jnp.isfinite(out).all())
    print("KERNEL_OK")
</pallas_src>

<mosaic_0001>
module attributes {stable_mosaic.version = 11 : i64} {
  func.func @treelstm_level_kernel(%arg0: memref<16x32xf32, #tpu.memory_space<vmem>>, %arg1: memref<16x32xf32, #tpu.memory_space<vmem>>, %arg2: memref<16x32xf32, #tpu.memory_space<vmem>>, %arg3: memref<32x96xf32, #tpu.memory_space<vmem>>, %arg4: memref<1x96xf32, #tpu.memory_space<vmem>>, %arg5: memref<32x96xf32, #tpu.memory_space<vmem>>, %arg6: memref<1x96xf32, #tpu.memory_space<vmem>>, %arg7: memref<32x32xf32, #tpu.memory_space<vmem>>, %arg8: memref<1x32xf32, #tpu.memory_space<vmem>>, %arg9: memref<32x32xf32, #tpu.memory_space<vmem>>, %arg10: memref<1x32xf32, #tpu.memory_space<vmem>>, %arg11: memref<16x32xf32, #tpu.memory_space<vmem>>, %arg12: memref<16x32xf32, #tpu.memory_space<vmem>>) attributes {dimension_semantics = [], scalar_prefetch = 0 : i64, scratch_operands = 0 : i64, tpu.core_type = #tpu.core_type<tc>} {
    %c0 = arith.constant 0 : index
    %c0_0 = arith.constant 0 : index
    %0 = vector.load %arg0[%c0, %c0_0] : memref<16x32xf32, #tpu.memory_space<vmem>>, vector<16x32xf32>
    %c0_1 = arith.constant 0 : index
    %c0_2 = arith.constant 0 : index
    %1 = vector.load %arg1[%c0_1, %c0_2] : memref<16x32xf32, #tpu.memory_space<vmem>>, vector<16x32xf32>
    %c0_3 = arith.constant 0 : index
    %c0_4 = arith.constant 0 : index
    %2 = vector.load %arg2[%c0_3, %c0_4] : memref<16x32xf32, #tpu.memory_space<vmem>>, vector<16x32xf32>
    %cst = arith.constant 0.000000e+00 : f32
    %3 = vector.broadcast %cst : f32 to vector<16x32xf32>
    %4 = arith.addf %3, %2 : vector<16x32xf32>
    %c0_5 = arith.constant 0 : index
    %c0_6 = arith.constant 0 : index
    %5 = vector.load %arg3[%c0_5, %c0_6] : memref<32x96xf32, #tpu.memory_space<vmem>>, vector<32x96xf32>
    %cst_7 = arith.constant dense<0.000000e+00> : vector<16x96xf32>
    %6 = tpu.matmul %0, %5, %cst_7 {dimension_numbers = #tpu.dot_dimension_numbers<[1], [0], [0], [1], [0, 0, 1, 1], [], []>} : vector<16x32xf32>, vector<32x96xf32>, vector<16x96xf32> -> vector<16x96xf32>
    %c0_8 = arith.constant 0 : index
    %c0_9 = arith.constant 0 : index
    %7 = vector.load %arg4[%c0_8, %c0_9] : memref<1x96xf32, #tpu.memory_space<vmem>>, vector<1x96xf32>
    %8 = vector.broadcast %7 : vector<1x96xf32> to vector<16x96xf32>
    %9 = arith.addf %6, %8 : vector<16x96xf32>
    %c0_10 = arith.constant 0 : index
    %c0_11 = arith.constant 0 : index
    %10 = vector.load %arg5[%c0_10, %c0_11] : memref<32x96xf32, #tpu.memory_space<vmem>>, vector<32x96xf32>
    %cst_12 = arith.constant dense<0.000000e+00> : vector<16x96xf32>
    %11 = tpu.matmul %4, %10, %cst_12 {dimension_numbers = #tpu.dot_dimension_numbers<[1], [0], [0], [1], [0, 0, 1, 1], [], []>} : vector<16x32xf32>, vector<32x96xf32>, vector<16x96xf32> -> vector<16x96xf32>
    %12 = arith.addf %9, %11 : vector<16x96xf32>
    %c0_13 = arith.constant 0 : index
    %c0_14 = arith.constant 0 : index
    %13 = vector.load %arg6[%c0_13, %c0_14] : memref<1x96xf32, #tpu.memory_space<vmem>>, vector<1x96xf32>
    %14 = vector.broadcast %13 : vector<1x96xf32> to vector<16x96xf32>
    %15 = arith.addf %12, %14 : vector<16x96xf32>
    %16 = vector.extract_strided_slice %15 {offsets = [0, 0], sizes = [16, 32], strides = [1, 1]} : vector<16x96xf32> to vector<16x32xf32>
    %17 = arith.negf %16 : vector<16x32xf32>
    %18 = math.exp %17 : vector<16x32xf32>
    %cst_15 = arith.constant 1.000000e+00 : f32
    %19 = vector.broadcast %cst_15 : f32 to vector<16x32xf32>
    %20 = arith.addf %19, %18 : vector<16x32xf32>
    %21 = arith.divf %19, %20 : vector<16x32xf32>
    %22 = vector.extract_strided_slice %15 {offsets = [0, 32], sizes = [16, 32], strides = [1, 1]} : vector<16x96xf32> to vector<16x32xf32>
    %23 = arith.negf %22 : vector<16x32xf32>
    %24 = math.exp %23 : vector<16x32xf32>
    %cst_16 = arith.constant 1.000000e+00 : f32
    %25 = vector.broadcast %cst_16 : f32 to vector<16x32xf32>
    %26 = arith.addf %25, %24 : vector<16x32xf32>
    %27 = arith.divf %25, %26 : vector<16x32xf32>
    %28 = vector.extract_strided_slice %15 {offsets = [0, 64], sizes = [16, 32], strides = [1, 1]} : vector<16x96xf32> to vector<16x32xf32>
    %29 = math.tanh %28 : vector<16x32xf32>
    %c0_17 = arith.constant 0 : index
    %c0_18 = arith.constant 0 : index
    %30 = vector.load %arg7[%c0_17, %c0_18] : memref<32x32xf32, #tpu.memory_space<vmem>>, vector<32x32xf32>
    %cst_19 = arith.constant dense<0.000000e+00> : vector<16x32xf32>
    %31 = tpu.matmul %0, %30, %cst_19 {dimension_numbers = #tpu.dot_dimension_numbers<[1], [0], [0], [1], [0, 0, 1, 1], [], []>} : vector<16x32xf32>, vector<32x32xf32>, vector<16x32xf32> -> vector<16x32xf32>
    %c0_20 = arith.constant 0 : index
    %c0_21 = arith.constant 0 : index
    %32 = vector.load %arg8[%c0_20, %c0_21] : memref<1x32xf32, #tpu.memory_space<vmem>>, vector<1x32xf32>
    %33 = vector.broadcast %32 : vector<1x32xf32> to vector<16x32xf32>
    %34 = arith.addf %31, %33 : vector<16x32xf32>
    %c0_22 = arith.constant 0 : index
    %c0_23 = arith.constant 0 : index
    %35 = vector.load %arg9[%c0_22, %c0_23] : memref<32x32xf32, #tpu.memory_space<vmem>>, vector<32x32xf32>
    %cst_24 = arith.constant dense<0.000000e+00> : vector<16x32xf32>
    %36 = tpu.matmul %2, %35, %cst_24 {dimension_numbers = #tpu.dot_dimension_numbers<[1], [0], [0], [1], [0, 0, 1, 1], [], []>} : vector<16x32xf32>, vector<32x32xf32>, vector<16x32xf32> -> vector<16x32xf32>
    %c0_25 = arith.constant 0 : index
    %c0_26 = arith.constant 0 : index
    %37 = vector.load %arg10[%c0_25, %c0_26] : memref<1x32xf32, #tpu.memory_space<vmem>>, vector<1x32xf32>
    %38 = vector.broadcast %37 : vector<1x32xf32> to vector<16x32xf32>
    %39 = arith.addf %36, %38 : vector<16x32xf32>
    %40 = arith.addf %39, %34 : vector<16x32xf32>
    %41 = arith.negf %40 : vector<16x32xf32>
    %42 = math.exp %41 : vector<16x32xf32>
    %cst_27 = arith.constant 1.000000e+00 : f32
    %43 = vector.broadcast %cst_27 : f32 to vector<16x32xf32>
    %44 = arith.addf %43, %42 : vector<16x32xf32>
    %45 = arith.divf %43, %44 : vector<16x32xf32>
    %46 = arith.mulf %45, %1 : vector<16x32xf32>
    %cst_28 = arith.constant 0.000000e+00 : f32
    %47 = vector.broadcast %cst_28 : f32 to vector<16x32xf32>
    %48 = arith.addf %47, %46 : vector<16x32xf32>
    %49 = arith.mulf %21, %29 : vector<16x32xf32>
    %50 = arith.addf %49, %48 : vector<16x32xf32>
    %51 = math.tanh %50 : vector<16x32xf32>
    %52 = arith.mulf %27, %51 : vector<16x32xf32>
    %c0_29 = arith.constant 0 : index
    %c0_30 = arith.constant 0 : index
    %53 = vector.load %arg11[%c0_29, %c0_30] : memref<16x32xf32, #tpu.memory_space<vmem>>, vector<16x32xf32>
    tpu.vector_store %arg11[%c0_29, %c0_30], %50 {strides = array<i32>} : memref<16x32xf32, #tpu.memory_space<vmem>>, vector<16x32xf32>,
    %c0_31 = arith.constant 0 : index
    %c0_32 = arith.constant 0 : index
    %54 = vector.load %arg12[%c0_31, %c0_32] : memref<16x32xf32, #tpu.memory_space<vmem>>, vector<16x32xf32>
    tpu.vector_store %arg12[%c0_31, %c0_32], %52 {strides = array<i32>} : memref<16x32xf32, #tpu.memory_space<vmem>>, vector<16x32xf32>,
    return
  }
}

</mosaic_0001>

<bundles_post_ra>
// kernel: tpu_custom_call.1
= control target key start
LH: loop header
LB: loop body
LE: loop exit
PB: predicated region body
PF: predicated region fallthrough
CT: control target
= control target key end

     0   :  { %18 = vsyncpa [#allocation3], 0  ;;  %s1253_s0 = inlined_call_operand.hbm [shape: f32[16,32], index: 0, kind: input, shape index: {}]   ;;  %s1254_s1 = inlined_call_operand.hbm [shape: f32[16,32], index: 1, kind: input, shape index: {}]   ;;  %s1255_s2 = inlined_call_operand.hbm [shape: f32[16,32], index: 2, kind: input, shape index: {}]   ;;  %s1256_s3 = inlined_call_operand.hbm [shape: f32[32,96], index: 3, kind: input, shape index: {}]   ;;  %s1257_s4 = inlined_call_operand.vmem [shape: f32[1,96], index: 4, kind: input, shape index: {}]   ;;  %s1258_s5 = inlined_call_operand.hbm [shape: f32[32,96], index: 5, kind: input, shape index: {}]   ;;  %s1259_s6 = inlined_call_operand.vmem [shape: f32[1,96], index: 6, kind: input, shape index: {}]   ;;  %s1260_s7 = inlined_call_operand.hbm [shape: f32[32,32], index: 7, kind: input, shape index: {}]   ;;  %s1261_s8 = inlined_call_operand.hbm [shape: f32[1,32], index: 8, kind: input, shape index: {}]   ;;  %s1262_s9 = inlined_call_operand.vmem [shape: f32[32,32], index: 9, kind: input, shape index: {}]   ;;  %s1263_s10 = inlined_call_operand.vmem [shape: f32[1,32], index: 10, kind: input, shape index: {}]   ;;  %s1264_s11 = inlined_call_operand.hbm [shape: f32[16,32], index: 11, kind: output, shape index: {0}]   ;;  %s1265_s12 = inlined_call_operand.hbm [shape: f32[16,32], index: 12, kind: output, shape index: {1}]  }
   0x1   :  { %19 = vsyncpa [#allocation6], 0 }
   0x2   :  { %20 = vsyncpa [#allocation9], 0 }
   0x3   :  { %21 = vsyncpa [#allocation12], 0 }
   0x4   :  { %22 = vsyncpa [#allocation4], 0 }
   0x5   :  { %23 = vsyncpa [#allocation16], 0  ;;  %s988_s21 = smov [#allocation5]   ;;  %s989_s23 = smov [#allocation8]  }
   0x6   :  { %s41_s22 = sshll.u32 %s988_s21, 4  ;;  %s65_s24 = sshll.u32 %s989_s23, 4  ;;  %s42_s22 = int_to_ptr.vmem [resolvable:$true] %s41_s22  ;;  %s1067_s24 = int_to_ptr.vmem [resolvable:$true] %s65_s24 }
   0x7   :  { %s778_s27 = scalar_lea.hbm %s1254_s1, 256 }
   0x8   :  { %p779_p0 = scmp.ne.s32.totalorder %s1254_s1, %s778_s27  ;;  %p782_p1 = scmp.lt.u32.totalorder %s778_s27, %s1254_s1 }
   0xa   :  { %p784_p2 = pnand %p782_p1, %p779_p0 }
   0xc   :  { %787 = shalt.err (!%p784_p2)
}
   0xd   :  { %s788_s14 = scalar_lea.vmem %s42_s22, 256  ;;  %p793_p4 = scmp.lt.s32.totalorder %s42_s22, %s42_s22 }
   0xe   :  { %p789_p3 = scmp.ne.s32.totalorder %s42_s22, %s788_s14  ;;  %p794_p5 = scmp.lt.s32.totalorder %s788_s14, %s788_s14 }
  0x10   :  { %p795_p6 = por %p794_p5, %p793_p4 }
  0x12   :  { %p796_p7 = pnand %p795_p6, %p789_p3 }
  0x14   :  { %799 = shalt.err (!%p796_p7)
}
  0x15   :  { %s990_s15 = smov 128   ;;  %s991_s16 = smov 8  }
  0x16   :  { %47 = dma.hbm_to_vmem [thread:$0]  %s1254_s1, 256, %s42_s22, [#allocation6], %s990_s15, %s990_s15, %s991_s16  }
  0x17   :  { %s800_s21 = scalar_lea.hbm %s1256_s3, 512 }
  0x18   :  { %p801_p8 = scmp.ne.s32.totalorder %s1256_s3, %s800_s21  ;;  %p804_p9 = scmp.lt.u32.totalorder %s800_s21, %s1256_s3 }
  0x1a   :  { %p806_p10 = pnand %p804_p9, %p801_p8 }
  0x1c   :  { %809 = shalt.err (!%p806_p10)
}
  0x1d   :  { %s810_s28 = scalar_lea.vmem %s1067_s24, 512  ;;  %p815_p12 = scmp.lt.s32.totalorder %s1067_s24, %s1067_s24 }
  0x1e   :  { %p811_p11 = scmp.ne.s32.totalorder %s1067_s24, %s810_s28  ;;  %p816_p13 = scmp.lt.s32.totalorder %s810_s28, %s810_s28 }
  0x20   :  { %p817_p0 = por %p816_p13, %p815_p12 }
  0x22   :  { %p818_p1 = pnand %p817_p0, %p811_p11 }
  0x24   :  { %821 = shalt.err (!%p818_p1)
}
  0x25   :  { %71 = dma.hbm_to_vmem [thread:$0]  %s1256_s3, 512, %s1067_s24, [#allocation9], %s990_s15, %s990_s15, %s991_s16  }
  0x26   :  { %s992_s29 = smov [#allocation11]   ;;  %s993_s13 = smov [#allocation2]  }
  0x27   :  { %s93_s30 = sshll.u32 %s992_s29, 4  ;;  %s29_s14 = sshll.u32 %s993_s13, 4  ;;  %s94_s30 = int_to_ptr.vmem [resolvable:$true] %s93_s30  ;;  %s1104_s14 = int_to_ptr.vmem [resolvable:$true] %s29_s14 }
  0x28   :  { %s822_s19 = scalar_lea.hbm %s1260_s7, 512 }
  0x29   :  { %p823_p2 = scmp.ne.s32.totalorder %s1260_s7, %s822_s19  ;;  %p826_p3 = scmp.lt.u32.totalorder %s822_s19, %s1260_s7 }
  0x2b   :  { %p828_p4 = pnand %p826_p3, %p823_p2 }
  0x2d   :  { %831 = shalt.err (!%p828_p4)
}
  0x2e   :  { %s832_s3 = scalar_lea.vmem %s94_s30, 512  ;;  %p837_p6 = scmp.lt.s32.totalorder %s94_s30, %s94_s30 }
  0x2f   :  { %p833_p5 = scmp.ne.s32.totalorder %s94_s30, %s832_s3  ;;  %p838_p7 = scmp.lt.s32.totalorder %s832_s3, %s832_s3 }
  0x31   :  { %p839_p8 = por %p838_p7, %p837_p6 }
  0x33   :  { %p840_p9 = pnand %p839_p8, %p833_p5 }
  0x35   :  { %843 = shalt.err (!%p840_p9)
}
  0x36   :  { %99 = dma.hbm_to_vmem [thread:$0]  %s1260_s7, 512, %s94_s30, [#allocation12], %s990_s15, %s990_s15, %s991_s16  }
  0x37   :  { %s844_s1 = scalar_lea.hbm %s1253_s0, 256 }
  0x38   :  { %p845_p10 = scmp.ne.s32.totalorder %s1253_s0, %s844_s1  ;;  %p848_p11 = scmp.lt.u32.totalorder %s844_s1, %s1253_s0 }
  0x3a   :  { %p850_p12 = pnand %p848_p11, %p845_p10 }
  0x3c   :  { %853 = shalt.err (!%p850_p12)
}
  0x3d   :  { %s854_s18 = scalar_lea.vmem %s1104_s14, 256  ;;  %p859_p0 = scmp.lt.s32.totalorder %s1104_s14, %s1104_s14 }
  0x3e   :  { %p855_p13 = scmp.ne.s32.totalorder %s1104_s14, %s854_s18  ;;  %p860_p1 = scmp.lt.s32.totalorder %s854_s18, %s854_s18 }
  0x40   :  { %p861_p2 = por %p860_p1, %p859_p0 }
  0x42   :  { %p862_p3 = pnand %p861_p2, %p855_p13 }
  0x44   :  { %865 = shalt.err (!%p862_p3)
}
  0x45   :  { %35 = dma.hbm_to_vmem [thread:$0]  %s1253_s0, 256, %s1104_s14, [#allocation3], %s990_s15, %s990_s15, %s991_s16  }
  0x46   :  { %s994_s19 = smov [#allocation7]   ;;  %s995_s21 = smov [#allocation10]  }
  0x47   :  { %s53_s20 = sshll.u32 %s994_s19, 4  ;;  %s79_s23 = sshll.u32 %s995_s21, 4  ;;  %s54_s20 = int_to_ptr.vmem [resolvable:$true] %s53_s20  ;;  %s1141_s23 = int_to_ptr.vmem [resolvable:$true] %s79_s23 }
  0x48   :  { %s866_s24 = scalar_lea.hbm %s1255_s2, 256 }
  0x49   :  { %p867_p4 = scmp.ne.s32.totalorder %s1255_s2, %s866_s24  ;;  %p870_p5 = scmp.lt.u32.totalorder %s866_s24, %s1255_s2 }
  0x4b   :  { %p872_p6 = pnand %p870_p5, %p867_p4 }
  0x4d   :  { %875 = shalt.err (!%p872_p6)
}
  0x4e   :  { %s876_s0 = scalar_lea.vmem %s54_s20, 256  ;;  %p881_p8 = scmp.lt.s32.totalorder %s54_s20, %s54_s20 }
  0x4f   :  { %p877_p7 = scmp.ne.s32.totalorder %s54_s20, %s876_s0  ;;  %p882_p9 = scmp.lt.s32.totalorder %s876_s0, %s876_s0 }
  0x51   :  { %p883_p10 = por %p882_p9, %p881_p8 }
  0x53   :  { %p884_p11 = pnand %p883_p10, %p877_p7 }
  0x55   :  { %887 = shalt.err (!%p884_p11)
}
  0x56   :  { %59 = dma.hbm_to_vmem [thread:$0]  %s1255_s2, 256, %s54_s20, [#allocation6], %s990_s15, %s990_s15, %s991_s16  }
  0x57   :  { %s888_s17 = scalar_lea.hbm %s1258_s5, 512 }
  0x58   :  { %p889_p12 = scmp.ne.s32.totalorder %s1258_s5, %s888_s17  ;;  %p892_p13 = scmp.lt.u32.totalorder %s888_s17, %s1258_s5 }
  0x5a   :  { %p894_p0 = pnand %p892_p13, %p889_p12 }
  0x5c   :  { %897 = shalt.err (!%p894_p0)
}
  0x5d   :  { %s898_s21 = scalar_lea.vmem %s1141_s23, 512  ;;  %p903_p2 = scmp.lt.s32.totalorder %s1141_s23, %s1141_s23 }
  0x5e   :  { %p899_p1 = scmp.ne.s32.totalorder %s1141_s23, %s898_s21  ;;  %p904_p3 = scmp.lt.s32.totalorder %s898_s21, %s898_s21 }
  0x60   :  { %p905_p4 = por %p904_p3, %p903_p2 }
  0x62   :  { %p906_p5 = pnand %p905_p4, %p899_p1 }
  0x64   :  { %909 = shalt.err (!%p906_p5)
}
  0x65   :  { %85 = dma.hbm_to_vmem [thread:$0]  %s1258_s5, 512, %s1141_s23, [#allocation9], %s990_s15, %s990_s15, %s991_s16  }
  0x66   :  { %s996_s25 = smov [#allocation13]   ;;  %s910_s27 = scalar_lea.hbm %s1261_s8, 16 }
  0x67   :  { %s106_s3 = sshll.u32 %s996_s25, 4  ;;  %p911_p6 = scmp.ne.s32.totalorder %s1261_s8, %s910_s27  ;;  %s107_s3 = int_to_ptr.vmem [resolvable:$true] %s106_s3 }
  0x68   :  { %p914_p7 = scmp.lt.u32.totalorder %s910_s27, %s1261_s8 }
  0x6a   :  { %p916_p8 = pnand %p914_p7, %p911_p6 }
  0x6c   :  { %919 = shalt.err (!%p916_p8)
}
  0x6d   :  { %s920_s22 = scalar_lea.vmem %s107_s3, 16  ;;  %s924_s5 = scalar_lea.vmem %s107_s3, 32 }
  0x6e   :  { %p921_p9 = scmp.ne.s32.totalorder %s107_s3, %s920_s22  ;;  %p925_p10 = scmp.lt.s32.totalorder %s107_s3, %s107_s3 }
  0x6f   :  { %p926_p11 = scmp.lt.s32.totalorder %s924_s5, %s920_s22 }
  0x71   :  { %p927_p12 = por %p926_p11, %p925_p10 }
  0x73   :  { %p928_p13 = pnand %p927_p12, %p921_p9 }
  0x75   :  { %931 = shalt.err (!%p928_p13)
}
  0x76   :  { %109 = dma.hbm_to_vmem [thread:$0]  %s1261_s8, 16, %s107_s3, [#allocation12]  }
  0x77   :  { %976 = dma.done.wait [#allocation3], 256  }
  0x78   :  { %977 = vsyncadd [#allocation3], 4294967040 }
  0x79   :  { %978 = dma.done.wait [#allocation6], 512  }
  0x7a   :  { %979 = vsyncadd [#allocation6], 4294966784 }
  0x7b   :  { %980 = dma.done.wait [#allocation9], 1024  }
  0x7c   :  { %981 = vsyncadd [#allocation9], 4294966272 }
  0x7d   :  { %982 = dma.done.wait [#allocation12], 528  }
  0x7e   :  { %983 = vsyncadd [#allocation12], 4294966768  ;;  %vm154_vm0 = vcmask 261120   ;;  %v143_v0 = vld [vmem:[#allocation8] sm:$0xff]  ;;  %v144_v1 = vld [vmem:[#allocation8 + $0x8] sm:$0xff]  ;;  %s997_s3 = smov 64  }
  0x7f   :  { %v145_v2 = vld [vmem:[#allocation8 + $0x10] sm:$0xff]  ;;  %v698_v3 = vpack.c.bf16 %v144_v1, %v143_v0  ;;  %v146_v4 = vld [vmem:[#allocation8 + $0x18] sm:$0xff]  ;;  %v236_v7 = vld [vmem:[#allocation10] sm:$0xff] }
  0x80   :  { %v135_v5 = vld [vmem:[#allocation2] sm:$0xff]  ;;  %v702_v6 = vpack.c.bf16 %v146_v4, %v145_v2  ;;  %v237_v8 = vld [vmem:[#allocation10 + $0x8] sm:$0xff]  ;;  %v346_v9 = vld [vmem:[#allocation11] sm:$0xff] }
  0x81   :  { %662 = vmatprep.mubr.msk.f32.mxu0 %vm154_vm0, %v135_v5  ;;  %684 = vmatprep.mubr.msk.f32.mxu1 %vm154_vm0, %v135_v5  ;;  %v347_v10 = vld [vmem:[#allocation11 + $0x8] sm:$0xff]  ;;  %v348_v11 = vld [vmem:[#allocation11 + $0x10] sm:$0xff]  ;;  %v706_v12 = vpack.c.bf16 %v237_v8, %v236_v7  ;;  %v349_v14 = vld [vmem:[#allocation11 + $0x18] sm:$0xff] }
  0x82   :  { %699 = vmatprep.subr.bf16.mxu0 %v698_v3  ;;  %v714_v13 = vpack.c.bf16 %v347_v10, %v346_v9  ;;  %v238_v15 = vld [vmem:[#allocation10 + $0x10] sm:$0xff]  ;;  %v239_v16 = vld [vmem:[#allocation10 + $0x18] sm:$0xff]  ;;  %v718_v17 = vpack.c.bf16 %v349_v14, %v348_v11  ;;  %v434_v24 = vld [vmem:[%s1262_s9 + $0x10] sm:$0xff] }
  0x83   :  { %701 = vmatpush3.bf16.msra.mxu0 %v698_v3  ;;  %v432_v18 = vld [vmem:[%s1262_s9] sm:$0xff]  ;;  %v433_v19 = vld [vmem:[%s1262_s9 + $0x8] sm:$0xff]  ;;  %v710_v21 = vpack.c.bf16 %v239_v16, %v238_v15  ;;  %v435_v25 = vld [vmem:[%s1262_s9 + $0x18] sm:$0xff] }
  0x84   :  { %703 = vmatprep.subr.bf16.mxu0 %v702_v6  ;;  %715 = vmatprep.subr.bf16.mxu1 %v714_v13  ;;  %v136_v20 = vld [vmem:[#allocation2 + $0x8] sm:$0xff]  ;;  %v139_v22 = vld [vmem:[#allocation7] sm:$0xff]  ;;  %v722_v23 = vpack.c.bf16 %v433_v19, %v432_v18  ;;  %v726_v26 = vpack.c.bf16 %v435_v25, %v434_v24  ;;  %v622_v40 = vld [vmem:[#allocation13] ss:$0 sm:$0xff] }
  0x85   :  { %717 = vmatpush3.bf16.msra.mxu1 %v714_v13  ;;  %v140_v27 = vld [vmem:[#allocation7 + $0x8] sm:$0xff]  ;;  %v614_v28 = vld [vmem:[%s1257_s4] ss:$0 sm:$0xff]  ;;  %v137_v59 = vld [vmem:[#allocation5] sm:$0xff] }
  0x86   :  { %719 = vmatprep.subr.bf16.mxu1 %v718_v17  ;;  %v619_v30 = vld [vmem:[%s1259_s6] ss:$0 sm:$0xff]  ;;  %v138_v1 = vld [vmem:[#allocation5 + $0x8] sm:$0xff]  ;;  %s998_s6 = smov 32  }
  0x87   :  { %705 = vmatpush3.bf16.msra.mxu0 %v702_v6  ;;  %v625_v42 = vld [vmem:[%s1263_s10] ss:$0 sm:$0xff]  ;;  %s999_s10 = smov [#allocation14]  }
  0x88   :  { %707 = vmatprep.subr.bf16.mxu0 %v706_v12  ;;  %s583_s26 = sshll.u32 %s999_s10, 4  ;;  %s584_s26 = int_to_ptr.vmem [resolvable:$true] %s583_s26 }
  0x89   :  { %721 = vmatpush3.bf16.msra.mxu1 %v718_v17  ;;  %s932_s27 = scalar_lea.vmem %s584_s26, 256  ;;  %p937_p1 = scmp.lt.s32.totalorder %s584_s26, %s584_s26 }
  0x8a   :  { %663 = vmatmul.mubr.msk.f32.vlgmr.msra.gmra.mrb[0].mxu0 %vm154_vm0, %v136_v20  ;;  %723 = vmatprep.subr.bf16.mxu1 %v722_v23  ;;  %p933_p0 = scmp.ne.s32.totalorder %s584_s26, %s932_s27  ;;  %p938_p2 = scmp.lt.s32.totalorder %s932_s27, %s932_s27 }
  0x8b   :  { %709 = vmatpush3.bf16.msra.mxu0 %v706_v12  ;;  %673 = vmatprep.mubr.msk.f32.mxu0 %vm154_vm0, %v139_v22 }
  0x8c   :  { %711 = vmatprep.subr.bf16.mxu0 %v710_v21  ;;  %685 = vmatmul.mubr.msk.f32.vlgmr.msra.gmra.mrb[0].mxu1 %vm154_vm0, %v136_v20  ;;  %p939_p3 = por %p938_p2, %p937_p1 }
  0x8d   :  { %725 = vmatpush3.bf16.msra.mxu1 %v722_v23  ;;  %695 = vmatprep.mubr.msk.f32.mxu1 %vm154_vm0, %v139_v22 }
  0x8e   :  { %727 = vmatprep.subr.bf16.mxu1 %v726_v26  ;;  %p940_p4 = pnand %p939_p3, %p933_p0 }
  0x8f   :  { %713 = vmatpush3.bf16.msra.mxu0 %v710_v21 }
  0x91   :  { %729 = vmatpush3.bf16.msra.mxu1 %v726_v26 }
  0x92   :  { %674 = vmatmul.mubr.msk.f32.vlgmr.msra.gmra.mrb[0].mxu0 %vm154_vm0, %v140_v27 }
  0x94   :  { %696 = vmatmul.mubr.msk.f32.vlgmr.msra.gmra.mrb[0].mxu1 %vm154_vm0, %v140_v27 }
 0x165   :  { %v675_v29 = vpop.f32.mrb[0].mxu0 }
 0x166   :  { %v312_v31 = vpop.f32.mrb[1].mxu0  ;;  %v730_v32 = vadd.f32 %v675_v29, %v614_v28 }
 0x167   :  { %v731_v33 = vadd.f32 %v614_v28, %v312_v31  ;;  %v697_v35 = vpop.f32.mrb[0].mxu1 }
 0x168   :  { %v331_v36 = vadd.f32 %v730_v32, %v619_v30  ;;  %v515_v37 = vpop.f32.mrb[1].mxu1  ;;  %v732_v43 = vadd.f32 %v697_v35, %v622_v40 }
 0x169   :  { %v330_v34 = vadd.f32 %v731_v33, %v619_v30  ;;  %v734_v41 = vadd.f32 %v622_v40, %v515_v37 }
 0x16a   :  { %v733_v45 = vadd.f32 %v732_v43, %v625_v42  ;;  %v621_v49 = vmul.f32 -1.442695, %v331_v36 }
 0x16b   :  { %754 = vtanh.f32 %v330_v34  ;;  %v735_v44 = vadd.f32 %v734_v41, %v625_v42  ;;  %v620_v47 = vmul.f32 -1.442695, %v330_v34 }
 0x16c   :  { %756 = vtanh.f32 %v331_v36  ;;  %v629_v48 = vmul.f32 -1.442695, %v733_v45 }
 0x16d   :  { %v628_v46 = vmul.f32 -1.442695, %v735_v44 }
 0x16f   :  { %758 = vpow2.f32 %v628_v46 }
 0x170   :  { %760 = vpow2.f32 %v620_v47 }
 0x171   :  { %762 = vpow2.f32 %v629_v48 }
 0x172   :  { %764 = vpow2.f32 %v621_v49 }
 0x175   :  { %v755_v38 = vpop.eup %754 }
 0x176   :  { %544 = vrot.lane.b32.xlu0 %v755_v38, %s997_s3  ;;  %v757_v39 = vpop.eup %756 }
 0x179   :  { %v759_v50 = vpop.eup %758 }
 0x17a   :  { %546 = vrot.lane.b32.xlu0 %v757_v39, %s997_s3  ;;  %v761_v51 = vpop.eup %760  ;;  %v532_v52 = vadd.f32 1.0, %v759_v50 }
 0x17b   :  { %v763_v53 = vpop.eup %762  ;;  %v338_v54 = vadd.f32 1.0, %v761_v51 }
 0x17c   :  { %v765_v55 = vpop.eup %764  ;;  %v533_v56 = vadd.f32 1.0, %v763_v53  ;;  %766 = vrcp.f32 %v532_v52 }
 0x17d   :  { %v339_v57 = vadd.f32 1.0, %v765_v55  ;;  %768 = vrcp.f32 %v338_v54 }
 0x17e   :  { %770 = vrcp.f32 %v533_v56 }
 0x17f   :  { %772 = vrcp.f32 %v339_v57 }
 0x186   :  { %v767_v58 = vpop.eup %766 }
 0x187   :  { %v769_v60 = vpop.eup %768  ;;  %v538_v62 = vmul.f32 %v767_v58, %v137_v59 }
 0x188   :  { %v771_v0 = vpop.eup %770 }
 0x189   :  { %v773_v3 = vpop.eup %772  ;;  %v539_v5 = vmul.f32 %v771_v0, %v138_v1 }
 0x1e8   :  { %v545_v61 = vpop.permute.xlu0 %544 }
 0x1e9   :  { %v550_v63 = vmul.f32 %v769_v60, %v545_v61 }
 0x1eb   :  { %v552_v2 = vadd.f32 %v550_v63, %v538_v62 }
 0x1ec   :  { %v547_v4 = vpop.permute.xlu0 %546 }
 0x1ed   :  { %774 = vtanh.f32 %v552_v2  ;;  %566 = vst.msk [vmem:[#allocation14] sm:$0xff] %vm154_vm0, %v552_v2  ;;  %v551_v6 = vmul.f32 %v773_v3, %v547_v4 }
 0x1ef   :  { %v553_v7 = vadd.f32 %v551_v6, %v539_v5 }
 0x1f1   :  { %776 = vtanh.f32 %v553_v7  ;;  %567 = vst.msk [vmem:[#allocation14 + $0x8] sm:$0xff] %vm154_vm0, %v553_v7 }
 0x1f7   :  { %v775_v8 = vpop.eup %774 }
 0x1f8   :  { %558 = vrot.lane.b32.xlu1 %v775_v8, %s998_s6 }
 0x1fb   :  { %v777_v9 = vpop.eup %776 }
 0x1fc   :  { %560 = vrot.lane.b32.xlu1 %v777_v9, %s998_s6 }
 0x1fd   :  { %943 = shalt.err (!%p940_p4)
}
 0x1fe   :  { %s944_s0 = scalar_lea.hbm %s1264_s11, 256 }
 0x1ff   :  { %p945_p5 = scmp.ne.s32.totalorder %s1264_s11, %s944_s0  ;;  %p948_p6 = scmp.lt.u32.totalorder %s944_s0, %s1264_s11 }
 0x201   :  { %p950_p7 = pnand %p948_p6, %p945_p5 }
 0x203   :  { %953 = shalt.err (!%p950_p7)
}
 0x204   :  { %589 = dma.vmem_to_hbm [thread:$0]  %s584_s26, 256, %s1264_s11, [#allocation4], %s990_s15, %s990_s15, %s991_s16  }
 0x205   :  { %s1000_s13 = smov 96   ;;  %s1001_s17 = smov [#allocation15]  }
 0x206   :  { %s595_s18 = sshll.u32 %s1001_s17, 4  ;;  %s596_s18 = int_to_ptr.vmem [resolvable:$true] %s595_s18 }
 0x207   :  { %s954_s7 = scalar_lea.vmem %s596_s18, 256  ;;  %p959_p9 = scmp.lt.s32.totalorder %s596_s18, %s596_s18 }
 0x208   :  { %p955_p8 = scmp.ne.s32.totalorder %s596_s18, %s954_s7  ;;  %p960_p10 = scmp.lt.s32.totalorder %s954_s7, %s954_s7 }
 0x20a   :  { %p961_p11 = por %p960_p10, %p959_p9 }
 0x20c   :  { %p962_p12 = pnand %p961_p11, %p955_p8 }
 0x26a   :  { %v559_v10 = vpop.permute.xlu1 %558 }
 0x26b   :  { %v564_v11 = vmul.f32 %v769_v60, %v559_v10 }
 0x26d   :  { %570 = vrot.lane.b32.xlu0 %v564_v11, %s1000_s13 }
 0x26e   :  { %v561_v12 = vpop.permute.xlu1 %560 }
 0x26f   :  { %v565_v13 = vmul.f32 %v773_v3, %v561_v12 }
 0x271   :  { %572 = vrot.lane.b32.xlu1 %v565_v13, %s1000_s13 }
 0x2df   :  { %v571_v14 = vpop.permute.xlu0 %570 }
 0x2e0   :  { %576 = vst.msk [vmem:[#allocation15] sm:$0xff] %vm154_vm0, %v571_v14 }
 0x2e3   :  { %v573_v15 = vpop.permute.xlu1 %572 }
 0x2e4   :  { %577 = vst.msk [vmem:[#allocation15 + $0x8] sm:$0xff] %vm154_vm0, %v573_v15 }
 0x2e5   :  { %965 = shalt.err (!%p962_p12)
}
 0x2e6   :  { %s966_s19 = scalar_lea.hbm %s1265_s12, 256 }
 0x2e7   :  { %p967_p13 = scmp.ne.s32.totalorder %s1265_s12, %s966_s19  ;;  %p970_p0 = scmp.lt.u32.totalorder %s966_s19, %s1265_s12 }
 0x2e9   :  { %p972_p1 = pnand %p970_p0, %p967_p13 }
 0x2eb   :  { %975 = shalt.err (!%p972_p1)
}
 0x2ec   :  { %601 = dma.vmem_to_hbm [thread:$0]  %s596_s18, 256, %s1265_s12, [#allocation16], %s990_s15, %s990_s15, %s991_s16  }
 0x2ed   :  { %984 = dma.done.wait [#allocation4], 256  }
 0x2ee   :  { %985 = vsyncadd [#allocation4], 4294967040 }
 0x2ef   :  { %986 = dma.done.wait [#allocation16], 256  }
 0x2f0   :  { %987 = vsyncadd [#allocation16], 4294967040 }
 0x2f1   :  { %608 = vsyncpa [#allocation3], 1 }
 0x2f2   :  { %609 = vsyncpa [#allocation6], 1 }
 0x2f3   :  { %610 = vsyncpa [#allocation9], 1 }
 0x2f4   :  { %611 = vsyncpa [#allocation12], 1 }
 0x2f5   :  { %612 = vsyncpa [#allocation4], 1 }
 0x2f6   :  { %613 = vsyncpa [#allocation16], 1 }

</bundles_post_ra>
